<compile_context>
chip_gen: v7x
topology: tpu7x:2x2x1
jax: 0.10.0
libtpu: 0.0.40
codegen_flags: <defaults>
</compile_context>

<pallas_src>
import math
import functools

import jax
import jax.numpy as jnp
from jax import lax
from jax.experimental import pallas as pl
from jax.experimental.pallas import tpu as pltpu


# ----------------------------------------------------------------------------
# small helpers
# ----------------------------------------------------------------------------

def _round_up(x, m):
    return ((x + m - 1) // m) * m


def _pick_row_tile(n, target=512, mult=8):
    """Largest divisor of n that is a multiple of `mult` and <= target."""
    for t in range(min(n, target), mult - 1, -1):
        if n % t == 0 and t % mult == 0:
            return t
    return n


# ----------------------------------------------------------------------------
# Tiled matmul (bf16 operands, f32 accumulation, fused activation epilogue)
# ----------------------------------------------------------------------------

def _matmul_kernel(x_ref, w_ref, o_ref, acc_ref, *, activation):
    @pl.when(pl.program_id(2) == 0)
    def _init():
        acc_ref[...] = jnp.zeros_like(acc_ref)

    acc_ref[...] += jnp.dot(x_ref[...], w_ref[...],
                            preferred_element_type=jnp.float32)

    @pl.when(pl.program_id(2) == pl.num_programs(2) - 1)
    def _finalize():
        y = acc_ref[...]
        if activation == "silu":
            y = y * jax.nn.sigmoid(y)
        elif activation == "sigmoid":
            y = jax.nn.sigmoid(y)
        o_ref[...] = y.astype(o_ref.dtype)


def pallas_matmul(x, w, *, out_dtype=jnp.bfloat16, activation=None):
    """(M, K) @ (K, N) -> (M, N). 3-D grid, reduction axis last, bf16 MXU."""
    M, K = x.shape
    K2, N = w.shape
    assert K == K2
    tm = min(256, _round_up(M, 8))
    tn = min(512, _round_up(N, 128))
    tk = min(512, _round_up(K, 128))
    Mp, Np, Kp = _round_up(M, tm), _round_up(N, tn), _round_up(K, tk)

    xp = x.astype(jnp.bfloat16)
    wp = w.astype(jnp.bfloat16)
    if (Mp, Kp) != (M, K):
        xp = jnp.pad(xp, ((0, Mp - M), (0, Kp - K)))
    if (Kp, Np) != (K, N):
        wp = jnp.pad(wp, ((0, Kp - K), (0, Np - N)))

    out = pl.pallas_call(
        functools.partial(_matmul_kernel, activation=activation),
        out_shape=jax.ShapeDtypeStruct((Mp, Np), out_dtype),
        grid=(Mp // tm, Np // tn, Kp // tk),
        in_specs=[
            pl.BlockSpec((tm, tk), lambda i, j, k: (i, k)),
            pl.BlockSpec((tk, tn), lambda i, j, k: (k, j)),
        ],
        out_specs=pl.BlockSpec((tm, tn), lambda i, j, k: (i, j)),
        scratch_shapes=[pltpu.VMEM((tm, tn), jnp.float32)],
        compiler_params=pltpu.CompilerParams(
            dimension_semantics=("parallel", "parallel", "arbitrary"),
            vmem_limit_bytes=64 * 1024 * 1024,
        ),
    )(xp, wp)
    if (Mp, Np) != (M, N):
        out = out[:M, :N]
    return out


def linear(x, w, *, activation=None, out_dtype=jnp.bfloat16):
    B, L, D = x.shape
    y = pallas_matmul(x.reshape(B * L, D), w,
                      activation=activation, out_dtype=out_dtype)
    return y.reshape(B, L, w.shape[1])


# ----------------------------------------------------------------------------
# Attention: all heads of one (batch, chunk) per grid step, in-kernel mask
# ----------------------------------------------------------------------------

def _attn_kernel(q_ref, k_ref, v_ref, o_ref):
    q = q_ref[0]                              # (H, C, dk) bf16
    k = k_ref[0]
    v = v_ref[0]
    s = jnp.einsum("hqd,hkd->hqk", q, k,
                   preferred_element_type=jnp.float32)   # (H, C, C) f32
    C = s.shape[-1]
    row = lax.broadcasted_iota(jnp.int32, (C, C), 0)
    col = lax.broadcasted_iota(jnp.int32, (C, C), 1)
    s = jnp.where((col <= row)[None, :, :], s, -1e30)     # causal mask (no DMA)
    s = s - jnp.max(s, axis=-1, keepdims=True)
    p = jnp.exp(s)
    denom = jnp.sum(p, axis=-1, keepdims=True)
    p = p * pl.reciprocal(denom, approx=True)
    o = jnp.einsum("hqk,hkd->hqd", p.astype(v.dtype), v,
                   preferred_element_type=jnp.float32)
    o_ref[0] = o.astype(o_ref.dtype)


def pallas_attention(q, k, v):
    """q, k: (BN, H, C, dk); v: (BN, H, C, dv) -> (BN, H, C, dv) bf16."""
    # TODO(synk): for large chunk sizes, flash-tile the KV axis with online softmax.
    BN, H, C, dk = q.shape
    dv = v.shape[-1]
    return pl.pallas_call(
        _attn_kernel,
        out_shape=jax.ShapeDtypeStruct((BN, H, C, dv), jnp.bfloat16),
        grid=(BN,),
        in_specs=[
            pl.BlockSpec((1, H, C, dk), lambda i: (i, 0, 0, 0)),
            pl.BlockSpec((1, H, C, dk), lambda i: (i, 0, 0, 0)),
            pl.BlockSpec((1, H, C, dv), lambda i: (i, 0, 0, 0)),
        ],
        out_specs=pl.BlockSpec((1, H, C, dv), lambda i: (i, 0, 0, 0)),
        compiler_params=pltpu.CompilerParams(
            dimension_semantics=("parallel",)),
    )(q.astype(jnp.bfloat16), k.astype(jnp.bfloat16), v.astype(jnp.bfloat16))


# ----------------------------------------------------------------------------
# TimestepNorm: chunked causal group norm with carried running statistics
# ----------------------------------------------------------------------------

def _tsnorm_kernel(x_ref, eg_ref, w_ref, b_ref, o_ref, s1_ref, s2_ref,
                   *, eps, group_size, tc):
    c = pl.program_id(1)

    @pl.when(c == 0)
    def _init():
        s1_ref[...] = jnp.zeros_like(s1_ref)
        s2_ref[...] = jnp.zeros_like(s2_ref)

    x = x_ref[0].astype(jnp.float32)                # (Tc, D)
    eg = eg_ref[...]                                # (D, G) one-hot group map
    s1 = jnp.dot(x, eg, preferred_element_type=jnp.float32)       # (Tc, G)
    s2 = jnp.dot(x * x, eg, preferred_element_type=jnp.float32)
    row = lax.broadcasted_iota(jnp.int32, (tc, tc), 0)
    col = lax.broadcasted_iota(jnp.int32, (tc, tc), 1)
    tri = (col <= row).astype(jnp.float32)          # small (Tc, Tc) prefix
    c1 = jnp.dot(tri, s1, preferred_element_type=jnp.float32) + s1_ref[...]
    c2 = jnp.dot(tri, s2, preferred_element_type=jnp.float32) + s2_ref[...]

    ridx = lax.broadcasted_iota(jnp.int32, (tc, 1), 0).astype(jnp.float32)
    base = (c * tc).astype(jnp.float32)
    cnt = (base + ridx + 1.0) * group_size          # running element count
    mean = c1 / cnt
    var = jnp.maximum(c2 / cnt - mean * mean, 0.0)  # clamp for safety
    mean_f = lax.dot_general(mean, eg, (((1,), (1,)), ((), ())),
                             preferred_element_type=jnp.float32)   # (Tc, D)
    var_f = lax.dot_general(var, eg, (((1,), (1,)), ((), ())),
                            preferred_element_type=jnp.float32)
    y = (x - mean_f) * lax.rsqrt(var_f + eps)
    o_ref[0] = (y * w_ref[...] + b_ref[...]).astype(o_ref.dtype)

    # carry cumulative sums into the next time chunk
    s1_ref[...] = c1[tc - 1:tc, :]
    s2_ref[...] = c2[tc - 1:tc, :]


def timestep_norm(x, weight, bias, num_groups, eps=1e-5,
                  out_dtype=jnp.bfloat16):
    """Causal (cumulative over time) group norm; chunk-tiled over L."""
    B, L, D = x.shape
    G = num_groups
    gs = D // G
    tc = _pick_row_tile(L, target=256)
    eg = (jnp.arange(D)[:, None] // gs ==
          jnp.arange(G)[None, :]).astype(jnp.float32)
    kern = functools.partial(_tsnorm_kernel, eps=float(eps),
                             group_size=float(gs), tc=tc)
    return pl.pallas_call(
        kern,
        out_shape=jax.ShapeDtypeStruct((B, L, D), out_dtype),
        grid=(B, L // tc),
        in_specs=[
            pl.BlockSpec((1, tc, D), lambda b, c: (b, c, 0)),
            pl.BlockSpec((D, G), lambda b, c: (0, 0)),
            pl.BlockSpec((1, D), lambda b, c: (0, 0)),
            pl.BlockSpec((1, D), lambda b, c: (0, 0)),
        ],
        out_specs=pl.BlockSpec((1, tc, D), lambda b, c: (b, c, 0)),
        scratch_shapes=[pltpu.VMEM((1, G), jnp.float32),
                        pltpu.VMEM((1, G), jnp.float32)],
        compiler_params=pltpu.CompilerParams(
            dimension_semantics=("parallel", "arbitrary")),
    )(x.astype(jnp.float32), eg, weight.reshape(1, D), bias.reshape(1, D))


# ----------------------------------------------------------------------------
# LayerNorm (row-tiled)
# ----------------------------------------------------------------------------

def _layernorm_kernel(x_ref, w_ref, b_ref, o_ref, *, eps):
    x = x_ref[...].astype(jnp.float32)
    mean = jnp.mean(x, axis=-1, keepdims=True)
    xc = x - mean
    var = jnp.mean(xc * xc, axis=-1, keepdims=True)
    y = xc * lax.rsqrt(var + eps)
    o_ref[...] = (y * w_ref[...] + b_ref[...]).astype(o_ref.dtype)


def layer_norm(x, weight, bias, eps=1e-5, out_dtype=jnp.bfloat16):
    B, L, D = x.shape
    M = B * L
    tm = _pick_row_tile(M, target=512)
    y = pl.pallas_call(
        functools.partial(_layernorm_kernel, eps=float(eps)),
        out_shape=jax.ShapeDtypeStruct((M, D), out_dtype),
        grid=(M // tm,),
        in_specs=[
            pl.BlockSpec((tm, D), lambda i: (i, 0)),
            pl.BlockSpec((1, D), lambda i: (0, 0)),
            pl.BlockSpec((1, D), lambda i: (0, 0)),
        ],
        out_specs=pl.BlockSpec((tm, D), lambda i: (i, 0)),
        compiler_params=pltpu.CompilerParams(
            dimension_semantics=("parallel",)),
    )(x.reshape(M, D).astype(jnp.float32),
      weight.reshape(1, D), bias.reshape(1, D))
    return y.reshape(B, L, D)


# ----------------------------------------------------------------------------
# CEMA: per-channel causal convolution from an (L, D) kernel
# ----------------------------------------------------------------------------

def cema_kernel_weights(p, L):
    """Collapse the N-dim complex EMA into a real (L, D) causal conv kernel."""
    alpha = jax.nn.sigmoid(p["alpha"])           # (D, N)
    delta = jax.nn.sigmoid(p["delta"])
    theta = p["theta"]
    gre, gim = p["gamma_re"], p["gamma_im"]
    mag = 1.0 - alpha * delta                    # |q| in (0, 1)
    l = jnp.arange(L, dtype=jnp.float32)
    decay = mag[:, :, None] ** l[None, None, :]                  # (D, N, L)
    phase = theta[:, :, None] * (l[None, None, :] + 1.0)
    kr = alpha[:, :, None] * decay * (
        gre[:, :, None] * jnp.cos(phase) - gim[:, :, None] * jnp.sin(phase))
    K = jnp.sum(kr, axis=1)                      # (D, L)
    return K.T.astype(jnp.float32)               # (L, D): row = lag


def _cema_kernel(xp_ref, k_ref, om_ref, o_ref, *, L):
    # xp_ref is the input zero-padded with L leading zero time steps: (1, 2L, D)
    xp = xp_ref[0].astype(jnp.float32)           # (2L, D)
    K = k_ref[...]                               # (L, D)
    om = om_ref[...]                             # (1, D)
    x = xp[L:2 * L, :]
    acc = x * om                                 # omega residual term
    # TODO(synk): for long sequences, replace the unrolled lag loop with a
    # chunked EMA scan (carry complex state across time tiles) or FFT conv.
    for lag in range(L):
        acc = acc + xp[L - lag:2 * L - lag, :] * K[lag:lag + 1, :]
    o_ref[0] = acc.astype(o_ref.dtype)


def cema(x, p):
    B, L, D = x.shape
    K = cema_kernel_weights(p, L)
    om = p["omega"].reshape(1, D).astype(jnp.float32)
    xpad = jnp.concatenate([jnp.zeros((B, L, D), x.dtype), x], axis=1)
    return pl.pallas_call(
        functools.partial(_cema_kernel, L=L),
        out_shape=jax.ShapeDtypeStruct((B, L, D), jnp.bfloat16),
        grid=(B,),
        in_specs=[
            pl.BlockSpec((1, 2 * L, D), lambda b: (b, 0, 0)),
            pl.BlockSpec((L, D), lambda b: (0, 0)),
            pl.BlockSpec((1, D), lambda b: (0, 0)),
        ],
        out_specs=pl.BlockSpec((1, L, D), lambda b: (b, 0, 0)),
        compiler_params=pltpu.CompilerParams(
            dimension_semantics=("parallel",)),
    )(xpad, K, om)


# ----------------------------------------------------------------------------
# Model glue (elementwise / reshapes / parameter math)
# ----------------------------------------------------------------------------

def silu(x):
    return x * jax.nn.sigmoid(x)


def precompute_rope(dim, end, base=10000.0):
    inv = 1.0 / (base ** (jnp.arange(0, dim, 2, dtype=jnp.float32) / dim))
    t = jnp.arange(end, dtype=jnp.float32)
    freqs = jnp.outer(t, inv)                    # (end, dim//2)
    return jnp.cos(freqs), jnp.sin(freqs)


def apply_rotary(x, cos, sin):
    # x: (B, nc, C, H, dh); cos/sin: (C, dh//2). Adjacent-pair complex rotation.
    B, nc, C, H, dh = x.shape
    x2 = x.reshape(B, nc, C, H, dh // 2, 2)
    xr, xi = x2[..., 0], x2[..., 1]
    c = cos[None, None, :, None, :]
    s = sin[None, None, :, None, :]
    yr = xr * c - xi * s
    yi = xr * s + xi * c
    return jnp.stack([yr, yi], axis=-1).reshape(B, nc, C, H, dh)


def mega_attention(params, x, rope_cos, rope_sin, cfg):
    """MovingAverageGatedAttention forward (inference, no cache, dropout=0)."""
    B, L, D = x.shape
    H = cfg["num_heads"]
    Z, Hd = cfg["z_dim"], cfg["value_dim"]
    zdh, vdh = Z // H, Hd // H
    C = min(L, cfg["chunk_size"])
    nc = L // C
    residual = x                                            # f32 residual stream

    xn = timestep_norm(x, params["tn_w"], params["tn_b"],
                       cfg["norm_num_groups"], cfg["norm_eps"])   # bf16
    mx = cema(xn, params["cema"])                                  # bf16

    v = linear(xn, params["wv"], activation="silu")          # fused silu, bf16
    base = linear(mx, params["wmx"]).astype(jnp.float32)     # (B, L, D+Z+Hd+D)
    u = jax.nn.sigmoid(base[..., :D])                        # output gate
    zr = silu(base[..., D:D + Z + Hd])
    hx = base[..., D + Z + Hd:]
    z, r = zr[..., :Z], zr[..., Z:]

    qk = z[..., None, :] * params["qk_gamma"] + params["qk_beta"]  # (B,L,2,Z)
    q = qk[..., 0, :].reshape(B, nc, C, H, zdh)
    k = qk[..., 1, :].reshape(B, nc, C, H, zdh)
    q = apply_rotary(q, rope_cos, rope_sin)
    k = apply_rotary(k, rope_cos, rope_sin)
    q = q * (zdh ** -0.5)
    vh = v.reshape(B, nc, C, H, vdh)

    def heads_major(t):
        return t.transpose(0, 1, 3, 2, 4).reshape(B * nc, H, C, t.shape[-1])

    ao = pallas_attention(heads_major(q), heads_major(k), heads_major(vh))
    h = (ao.reshape(B, nc, H, C, vdh).transpose(0, 1, 3, 2, 4)
           .reshape(B, L, Hd).astype(jnp.float32))

    h = silu(hx + linear(h * r, params["wh"]).astype(jnp.float32))
    return residual + u * (h - residual)                     # addcmul gate


def nffn(params, y, residual, swiglu):
    """NormalizedFeedForwardNetwork with two-hop residual (residual = block input)."""
    xn = layer_norm(y, params["ln_w"], params["ln_b"])       # bf16
    if swiglu:
        fc13 = jnp.concatenate([params["fc1"], params["fc3"]], axis=1)
        F = params["fc1"].shape[1]
        h13 = linear(xn, fc13).astype(jnp.float32)           # one matmul, xn read once
        h = silu(h13[..., :F]) * h13[..., F:]
    else:
        h = linear(xn, params["fc1"], activation="silu").astype(jnp.float32)
    out = linear(h, params["fc2"]).astype(jnp.float32)
    return residual + out


def output_layer(params, x, embed_w, cfg):
    xn = timestep_norm(x, params["tn_w"], params["tn_b"],
                       cfg["norm_num_groups"], cfg["norm_eps"])
    B, L, D = xn.shape
    # shared embedding head; vocab (N) axis is tiled by pallas_matmul
    logits = pallas_matmul(xn.reshape(B * L, D), embed_w.T,
                           out_dtype=jnp.float32)
    return logits.reshape(B, L, -1)


def mega_forward(params, tokens, cfg):
    B, S = tokens.shape
    D = cfg["model_dim"]
    emb = jnp.take(params["embed"], tokens, axis=0)          # (B, S, D) f32
    x = emb * math.sqrt(D) if cfg["scale_emb"] else emb      # dropout = no-op

    C = min(S, cfg["chunk_size"])
    zdh = cfg["z_dim"] // cfg["num_heads"]
    cos, sin = precompute_rope(zdh, cfg["chunk_size"], cfg["rope_base"])
    cos, sin = cos[:C], sin[:C]

    for lp in params["layers"]:
        y = mega_attention(lp["mega"], x, cos, sin, cfg)
        x = nffn(lp["nffn"], y, x, cfg["swiglu"])

    logits = output_layer(params["out"], x, params["embed"], cfg)
    return logits.astype(jnp.float32)


# ----------------------------------------------------------------------------
# Deterministic parameter init (synthetic; not a checkpoint load)
# ----------------------------------------------------------------------------

def init_params(key, cfg):
    D, Z, Hd = cfg["model_dim"], cfg["z_dim"], cfg["value_dim"]
    N, F, V = cfg["cema_ndim"], cfg["ffn_hidden_dim"], cfg["vocab_size"]

    def normal(k, shape, std=0.02):
        return jax.random.normal(k, shape, dtype=jnp.float32) * std

    keys = jax.random.split(key, cfg["num_layers"] + 1)
    params = {"embed": normal(keys[0], (V, D), 1.0 / math.sqrt(D))}
    layers = []
    for li in range(cfg["num_layers"]):
        lk = jax.random.split(keys[1 + li], 16)
        mega = dict(
            tn_w=jnp.ones((D,), jnp.float32),
            tn_b=jnp.zeros((D,), jnp.float32),
            cema=dict(
                alpha=normal(lk[0], (D, N), 1.0),
                delta=normal(lk[1], (D, N), 1.0),
                theta=jax.random.uniform(lk[2], (D, N), jnp.float32, 0.0,
                                         2.0 * math.pi),
                gamma_re=normal(lk[3], (D, N), 1.0 / math.sqrt(N)),
                gamma_im=normal(lk[4], (D, N), 1.0 / math.sqrt(N)),
                omega=normal(lk[5], (D,), 1.0),
            ),
            wv=normal(lk[6], (D, Hd)),
            wmx=normal(lk[7], (D, D + Z + Hd + D)),
            qk_gamma=1.0 + normal(lk[8], (2, Z), 0.1),
            qk_beta=jnp.zeros((2, Z), jnp.float32),
            wh=normal(lk[9], (Hd, D)),
        )
        ffn = dict(
            ln_w=jnp.ones((D,), jnp.float32),
            ln_b=jnp.zeros((D,), jnp.float32),
            fc1=normal(lk[10], (D, F)),
            fc3=normal(lk[11], (D, F)),
            fc2=normal(lk[12], (F, D)),
        )
        layers.append(dict(mega=mega, nffn=ffn))
    params["layers"] = layers
    params["out"] = dict(tn_w=jnp.ones((D,), jnp.float32),
                         tn_b=jnp.zeros((D,), jnp.float32))
    return params


if __name__ == "__main__":
    cfg = dict(
        vocab_size=64, model_dim=32, z_dim=16, value_dim=32, num_heads=2,
        cema_ndim=4, chunk_size=16, num_layers=2, ffn_hidden_dim=64,
        swiglu=True, norm_num_groups=4, norm_eps=1e-5, rope_base=10000.0,
        efficient_attn=False, scale_emb=True, share_emb=True,
    )
    key = jax.random.PRNGKey(0)
    pkey, tkey = jax.random.split(key)
    params = init_params(pkey, cfg)
    tokens = jax.random.randint(tkey, (2, 16), 0, cfg["vocab_size"],
                                dtype=jnp.int32)

    logits = mega_forward(params, tokens, cfg)
    jax.block_until_ready(logits)

    assert logits.shape == (2, 16, cfg["vocab_size"]), logits.shape
    assert logits.dtype == jnp.float32
    assert bool(jnp.all(jnp.isfinite(logits)))
    print("KERNEL_OK")
</pallas_src>

<mosaic_0001>
module attributes {stable_mosaic.version = 11 : i64} {
  func.func @_tsnorm_kernel(%arg0: i32, %arg1: i32, %arg2: memref<1x16x32xf32, #tpu.memory_space<vmem>>, %arg3: memref<32x4xf32, #tpu.memory_space<vmem>>, %arg4: memref<1x32xf32, #tpu.memory_space<vmem>>, %arg5: memref<1x32xf32, #tpu.memory_space<vmem>>, %arg6: memref<1x16x32xbf16, #tpu.memory_space<vmem>>, %arg7: memref<1x4xf32, #tpu.memory_space<vmem>>, %arg8: memref<1x4xf32, #tpu.memory_space<vmem>>) attributes {dimension_semantics = [#tpu.dimension_semantics<parallel>, #tpu.dimension_semantics<arbitrary>], iteration_bounds = array<i64: 2, 1>, scalar_prefetch = 0 : i64, scratch_operands = 2 : i64, tpu.core_type = #tpu.core_type<tc>, window_params = [{transform_indices = @transform_0, window_bounds = array<i64: 1, 16, 32>}, {pipeline_mode = #tpu.pipeline_mode<synchronous>, transform_indices = @transform_1, window_bounds = array<i64: 32, 4>}, {pipeline_mode = #tpu.pipeline_mode<synchronous>, transform_indices = @transform_2, window_bounds = array<i64: 1, 32>}, {pipeline_mode = #tpu.pipeline_mode<synchronous>, transform_indices = @transform_3, window_bounds = array<i64: 1, 32>}, {transform_indices = @transform_4, window_bounds = array<i64: 1, 16, 32>}]} {
    %c0_i32 = arith.constant 0 : i32
    %0 = arith.cmpi eq, %arg1, %c0_i32 : i32
    %1 = arith.extui %0 : i1 to i32
    %c0_i32_0 = arith.constant 0 : i32
    %2 = arith.cmpi ne, %1, %c0_i32_0 : i32
    scf.if %2 {
      %cst_29 = arith.constant 0.000000e+00 : f32
      %61 = vector.broadcast %cst_29 : f32 to vector<1x4xf32>
      %c0_30 = arith.constant 0 : index
      %c0_31 = arith.constant 0 : index
      %62 = vector.load %arg7[%c0_30, %c0_31] : memref<1x4xf32, #tpu.memory_space<vmem>>, vector<1x4xf32>
      tpu.vector_store %arg7[%c0_30, %c0_31], %61 {strides = array<i32>} : memref<1x4xf32, #tpu.memory_space<vmem>>, vector<1x4xf32>,
      %cst_32 = arith.constant 0.000000e+00 : f32
      %63 = vector.broadcast %cst_32 : f32 to vector<1x4xf32>
      %c0_33 = arith.constant 0 : index
      %c0_34 = arith.constant 0 : index
      %64 = vector.load %arg8[%c0_33, %c0_34] : memref<1x4xf32, #tpu.memory_space<vmem>>, vector<1x4xf32>
      tpu.vector_store %arg8[%c0_33, %c0_34], %63 {strides = array<i32>} : memref<1x4xf32, #tpu.memory_space<vmem>>, vector<1x4xf32>,
    } else {
    }
    %c0 = arith.constant 0 : index
    %c0_1 = arith.constant 0 : index
    %c0_2 = arith.constant 0 : index
    %3 = vector.load %arg2[%c0, %c0_1, %c0_2] : memref<1x16x32xf32, #tpu.memory_space<vmem>>, vector<1x16x32xf32>
    %4 = vector.shape_cast %3 : vector<1x16x32xf32> to vector<16x32xf32>
    %c0_3 = arith.constant 0 : index
    %c0_4 = arith.constant 0 : index
    %5 = vector.load %arg3[%c0_3, %c0_4] : memref<32x4xf32, #tpu.memory_space<vmem>>, vector<32x4xf32>
    %cst = arith.constant dense<0.000000e+00> : vector<16x4xf32>
    %6 = tpu.matmul %4, %5, %cst {dimension_numbers = #tpu.dot_dimension_numbers<[1], [0], [0], [1], [0, 0, 1, 1], [], []>} : vector<16x32xf32>, vector<32x4xf32>, vector<16x4xf32> -> vector<16x4xf32>
    %7 = arith.mulf %4, %4 : vector<16x32xf32>
    %cst_5 = arith.constant dense<0.000000e+00> : vector<16x4xf32>
    %8 = tpu.matmul %7, %5, %cst_5 {dimension_numbers = #tpu.dot_dimension_numbers<[1], [0], [0], [1], [0, 0, 1, 1], [], []>} : vector<16x32xf32>, vector<32x4xf32>, vector<16x4xf32> -> vector<16x4xf32>
    %9 = tpu.iota {dimensions = array<i32: 0>} : vector<16x16xi32>
    %10 = tpu.iota {dimensions = array<i32: 1>} : vector<16x16xi32>
    %11 = arith.cmpi sle, %10, %9 : vector<16x16xi32>
    %12 = arith.extui %11 : vector<16x16xi1> to vector<16x16xi32>
    %13 = arith.sitofp %12 : vector<16x16xi32> to vector<16x16xf32>
    %cst_6 = arith.constant dense<0.000000e+00> : vector<16x4xf32>
    %14 = tpu.matmul %13, %6, %cst_6 {dimension_numbers = #tpu.dot_dimension_numbers<[1], [0], [0], [1], [0, 0, 1, 1], [], []>} : vector<16x16xf32>, vector<16x4xf32>, vector<16x4xf32> -> vector<16x4xf32>
    %c0_7 = arith.constant 0 : index
    %c0_8 = arith.constant 0 : index
    %15 = vector.load %arg7[%c0_7, %c0_8] : memref<1x4xf32, #tpu.memory_space<vmem>>, vector<1x4xf32>
    %16 = vector.broadcast %15 : vector<1x4xf32> to vector<16x4xf32>
    %17 = arith.addf %14, %16 : vector<16x4xf32>
    %cst_9 = arith.constant dense<0.000000e+00> : vector<16x4xf32>
    %18 = tpu.matmul %13, %8, %cst_9 {dimension_numbers = #tpu.dot_dimension_numbers<[1], [0], [0], [1], [0, 0, 1, 1], [], []>} : vector<16x16xf32>, vector<16x4xf32>, vector<16x4xf32> -> vector<16x4xf32>
    %c0_10 = arith.constant 0 : index
    %c0_11 = arith.constant 0 : index
    %19 = vector.load %arg8[%c0_10, %c0_11] : memref<1x4xf32, #tpu.memory_space<vmem>>, vector<1x4xf32>
    %20 = vector.broadcast %19 : vector<1x4xf32> to vector<16x4xf32>
    %21 = arith.addf %18, %20 : vector<16x4xf32>
    %22 = tpu.iota {dimensions = array<i32: 0>} : vector<16x1xi32>
    %23 = arith.sitofp %22 : vector<16x1xi32> to vector<16x1xf32>
    %c16_i32 = arith.constant 16 : i32
    %24 = arith.muli %arg1, %c16_i32 : i32
    %25 = arith.sitofp %24 : i32 to f32
    %26 = vector.broadcast %25 : f32 to vector<16x1xf32>
    %27 = arith.addf %26, %23 : vector<16x1xf32>
    %cst_12 = arith.constant 1.000000e+00 : f32
    %28 = vector.broadcast %cst_12 : f32 to vector<16x1xf32>
    %29 = arith.addf %27, %28 : vector<16x1xf32>
    %cst_13 = arith.constant 8.000000e+00 : f32
    %30 = vector.broadcast %cst_13 : f32 to vector<16x1xf32>
    %31 = arith.mulf %29, %30 : vector<16x1xf32>
    %32 = vector.broadcast %31 : vector<16x1xf32> to vector<16x4xf32>
    %33 = arith.divf %17, %32 : vector<16x4xf32>
    %34 = vector.broadcast %31 : vector<16x1xf32> to vector<16x4xf32>
    %35 = arith.divf %21, %34 : vector<16x4xf32>
    %36 = arith.mulf %33, %33 : vector<16x4xf32>
    %37 = arith.subf %35, %36 : vector<16x4xf32>
    %cst_14 = arith.constant 0.000000e+00 : f32
    %38 = vector.broadcast %cst_14 : f32 to vector<16x4xf32>
    %39 = arith.maximumf %37, %38 : vector<16x4xf32>
    %cst_15 = arith.constant dense<0.000000e+00> : vector<16x32xf32>
    %40 = tpu.matmul %33, %5, %cst_15 {dimension_numbers = #tpu.dot_dimension_numbers<[1], [1], [0], [0], [0, 0, 1, 0], [], []>} : vector<16x4xf32>, vector<32x4xf32>, vector<16x32xf32> -> vector<16x32xf32>
    %cst_16 = arith.constant dense<0.000000e+00> : vector<16x32xf32>
    %41 = tpu.matmul %39, %5, %cst_16 {dimension_numbers = #tpu.dot_dimension_numbers<[1], [1], [0], [0], [0, 0, 1, 0], [], []>} : vector<16x4xf32>, vector<32x4xf32>, vector<16x32xf32> -> vector<16x32xf32>
    %42 = arith.subf %4, %40 : vector<16x32xf32>
    %cst_17 = arith.constant 9.99999974E-6 : f32
    %43 = vector.broadcast %cst_17 : f32 to vector<16x32xf32>
    %44 = arith.addf %41, %43 : vector<16x32xf32>
    %45 = math.rsqrt %44 : vector<16x32xf32>
    %46 = arith.mulf %42, %45 : vector<16x32xf32>
    %c0_18 = arith.constant 0 : index
    %c0_19 = arith.constant 0 : index
    %47 = vector.load %arg4[%c0_18, %c0_19] : memref<1x32xf32, #tpu.memory_space<vmem>>, vector<1x32xf32>
    %48 = vector.broadcast %47 : vector<1x32xf32> to vector<16x32xf32>
    %49 = arith.mulf %46, %48 : vector<16x32xf32>
    %c0_20 = arith.constant 0 : index
    %c0_21 = arith.constant 0 : index
    %50 = vector.load %arg5[%c0_20, %c0_21] : memref<1x32xf32, #tpu.memory_space<vmem>>, vector<1x32xf32>
    %51 = vector.broadcast %50 : vector<1x32xf32> to vector<16x32xf32>
    %52 = arith.addf %49, %51 : vector<16x32xf32>
    %53 = arith.truncf %52 : vector<16x32xf32> to vector<16x32xbf16>
    %c0_22 = arith.constant 0 : index
    %c0_23 = arith.constant 0 : index
    %c0_24 = arith.constant 0 : index
    %54 = vector.load %arg6[%c0_22, %c0_23, %c0_24] : memref<1x16x32xbf16, #tpu.memory_space<vmem>>, vector<1x16x32xbf16>
    %55 = vector.shape_cast %54 : vector<1x16x32xbf16> to vector<16x32xbf16>
    %56 = vector.shape_cast %53 : vector<16x32xbf16> to vector<1x16x32xbf16>
    tpu.vector_store %arg6[%c0_22, %c0_23, %c0_24], %56 {strides = array<i32>} : memref<1x16x32xbf16, #tpu.memory_space<vmem>>, vector<1x16x32xbf16>,
    %57 = vector.extract_strided_slice %17 {offsets = [15, 0], sizes = [1, 4], strides = [1, 1]} : vector<16x4xf32> to vector<1x4xf32>
    %c0_25 = arith.constant 0 : index
    %c0_26 = arith.constant 0 : index
    %58 = vector.load %arg7[%c0_25, %c0_26] : memref<1x4xf32, #tpu.memory_space<vmem>>, vector<1x4xf32>
    tpu.vector_store %arg7[%c0_25, %c0_26], %57 {strides = array<i32>} : memref<1x4xf32, #tpu.memory_space<vmem>>, vector<1x4xf32>,
    %59 = vector.extract_strided_slice %21 {offsets = [15, 0], sizes = [1, 4], strides = [1, 1]} : vector<16x4xf32> to vector<1x4xf32>
    %c0_27 = arith.constant 0 : index
    %c0_28 = arith.constant 0 : index
    %60 = vector.load %arg8[%c0_27, %c0_28] : memref<1x4xf32, #tpu.memory_space<vmem>>, vector<1x4xf32>
    tpu.vector_store %arg8[%c0_27, %c0_28], %59 {strides = array<i32>} : memref<1x4xf32, #tpu.memory_space<vmem>>, vector<1x4xf32>,
    return
  }
  func.func @transform_0(%arg0: i32, %arg1: i32) -> (i32, i32, i32) {
    %c0_i32 = arith.constant 0 : i32
    %c0_i32_0 = arith.constant 0 : i32
    return %arg0, %arg1, %c0_i32 : i32, i32, i32
  }
  func.func @transform_1(%arg0: i32, %arg1: i32) -> (i32, i32) {
    %c0_i32 = arith.constant 0 : i32
    %c0_i32_0 = arith.constant 0 : i32
    %c0_i32_1 = arith.constant 0 : i32
    return %c0_i32, %c0_i32_0 : i32, i32
  }
  func.func @transform_2(%arg0: i32, %arg1: i32) -> (i32, i32) {
    %c0_i32 = arith.constant 0 : i32
    %c0_i32_0 = arith.constant 0 : i32
    %c0_i32_1 = arith.constant 0 : i32
    return %c0_i32, %c0_i32_0 : i32, i32
  }
  func.func @transform_3(%arg0: i32, %arg1: i32) -> (i32, i32) {
    %c0_i32 = arith.constant 0 : i32
    %c0_i32_0 = arith.constant 0 : i32
    %c0_i32_1 = arith.constant 0 : i32
    return %c0_i32, %c0_i32_0 : i32, i32
  }
  func.func @transform_4(%arg0: i32, %arg1: i32) -> (i32, i32, i32) {
    %c0_i32 = arith.constant 0 : i32
    %c0_i32_0 = arith.constant 0 : i32
    return %arg0, %arg1, %c0_i32 : i32, i32, i32
  }
}

</mosaic_0001>

<bundles_post_ra>
// kernel: tpu_custom_call.1
= control target key start
LH: loop header
LB: loop body
LE: loop exit
PB: predicated region body
PF: predicated region fallthrough
CT: control target
= control target key end

     0   :  { %9 = vsyncpa [#allocation5], 0  ;;  %s1431_s0 = inlined_call_operand.vmem [shape: f32[2,16,32], index: 0, kind: input, shape index: {}]   ;;  %s1432_s1 = inlined_call_operand.vmem [shape: f32[32,4], index: 1, kind: input, shape index: {}]   ;;  %s1433_s2 = inlined_call_operand.vmem [shape: f32[1,32], index: 2, kind: input, shape index: {}]   ;;  %s1434_s3 = inlined_call_operand.vmem [shape: f32[1,32], index: 3, kind: input, shape index: {}]   ;;  %s1435_s4 = inlined_call_operand.hbm [shape: bf16[2,16,32], index: 4, kind: output, shape index: {}]  }
   0x1   :  { %11 = vsyncpa [#allocation5 + $0x1], 0  ;;  %s1276_s15 = smov 0   ;;  %s1278_s16 = smov 0  }
   0x2   :  { %s1280_s17 = smov 0   ;;  %s1282_s18 = smov 0  }
   0x3   :  { %s1284_s19 = smov 0   ;;  %s1286_s20 = smov 0  }
   0x4 LB: > { %s918_s21 = sadd.s32 4294967295, %s1245_s20   ;;  %s919_s22 = sadd.s32 4294967294, %s1245_s20   ;;  %s1245_s20 = sphi %s1286_s20, %s17_s20   ;;  %s1241_s19 = sphi %s1284_s19, %s1442_s19   ;;  %s1237_s18 = sphi %s1282_s18, %s1441_s18   ;;  %s1233_s17 = sphi %s1280_s17, %s1440_s17   ;;  %s1229_s16 = sphi %s1278_s16, %s1439_s16   ;;  %s1225_s15 = sphi %s1276_s15, %s1438_s15  }
   0x5   : > { %s29_s23 = sadd.s32 1, %s1241_s19  ;;  %s129_s24 = sadd.s32 1, %s1233_s17 }
   0x6   : > { %p31_p0 = scmp.ge.s32.totalorder %s29_s23, 2  ;;  %p139_p1 = scmp.ne.s32.totalorder %s1233_s17, %s1229_s16 }
   0x7   : > { %p140_p2 = scmp.eq.s32.totalorder %s918_s21, 1  ;;  %p145_p3 = scmp.ne.s32.totalorder %s1229_s16, %s1225_s15 }
   0x8   : > { %s1444_s23 = smov (%p31_p0, %s29_s23), 0  ;;  %p146_p5 = scmp.eq.s32.totalorder %s919_s22, 1 }
   0x9   : > { %p1316_p4 = por %p140_p2, %p139_p1  ;;  %s124_s26 = ssub.s32 %s1241_s19, %s1444_s23 }
   0xa   : > { %p922_p6 = scmp.ge.s32.totalorder %s1245_s20, 1  ;;  %p127_p7 = scmp.eq.s32.totalorder %s124_s26, 0 }
   0xb   : > { %p1323_p8 = por %p146_p5, %p145_p3  ;;  %p186_p9 = scmp.lt.s32.totalorder %s1245_s20, 3 }
   0xc   : > { %s1329_s28 = scalar_select %p127_p7, %s1233_s17, %s129_s24  }
   0xd   : > { %p187_p10 = pnand %p922_p6, %p186_p9 }
   0xe   : > { %v236_v0 = vld [vmem:[%s1432_s1] sm:$0xff] (!%p187_p10)  ;;  %v237_v1 = vld [vmem:[%s1432_s1 + $0x8] sm:$0xff] (!%p187_p10)  ;;  %v238_v2 = vld [vmem:[%s1432_s1 + $0x10] sm:$0xff] (!%p187_p10)  ;;  %p217_p11 = scmp.lt.s32.totalorder (!%p187_p10), %s1237_s18, 1  ;;  %vm240_vm0 = vcmask (!%p187_p10), 261120   ;;  %v405_v10 = vlaneseq (!%p187_p10)  ;;  %vm423_vm2 = vcmask (!%p187_p10), 130048  }
   0xf   : > { %190 = sbr.rel (%p187_p10) target bundleno = 720 (0x2d0), region = 36  ;;  %v1053_v3 = vpack.c.bf16 (!%p187_p10), %v237_v1, %v236_v0  ;;  %v239_v4 = vld [vmem:[%s1432_s1 + $0x18] sm:$0xff] (!%p187_p10)  ;;  %v1247_v14 = vmov (!%p187_p10), 0.0   ;;  %vm231_vm4 = vcmask (!%p187_p10), 24576   ;;  %vm610_vm5 = vcmask (!%p187_p10), 31744   ;;  %s213_s22 = sand.u32 (!%p187_p10), 1, %s1229_s16  }
  0x10   : > { %v1057_v5 = vpack.c.bf16 (!%p187_p10), %v239_v4, %v238_v2  ;;  %v406_v11 = vshrl.u32 (!%p187_p10), %v405_v10, 7  ;;  %v409_v12 = vand.u32 (!%p187_p10), 127, %v405_v10  ;;  %232 = vst.msk [vmem:[#allocation2] sm:$0x1] (!%p187_p10), %vm231_vm4, %v1247_v14  ;;  %233 = vst.msk [vmem:[#allocation3] sm:$0x1] (!%p187_p10), %vm231_vm4, %v1247_v14 }
  0x11   : > { %1054 = vmatprep.subr.bf16.mxu0 (!%p187_p10), %v1053_v3  ;;  %1062 = vmatprep.subr.bf16.mxu1 (!%p187_p10), %v1053_v3  ;;  %vm1078_vm6 = vmpackc.low (!%p187_p10), %vm610_vm5, %vm610_vm5  ;;  %vm820_vm7 = vcmask (!%p187_p10), 31751   ;;  %s923_s24 = sshll.u32 (!%p187_p10), %s213_s22, 3  ;;  %v950_v60 = vld [vmem:[%s1433_s2] ss:$0 sm:$0xff] (!%p187_p10)  ;;  %s962_s6 = sshll.u32 (!%p187_p10), %s1237_s18, 7  ;;  %vm817_vm8 = vcmask (!%p187_p10), 257024  }
  0x12   : > { %1056 = vmatpush3.bf16.msra.mxu0 (!%p187_p10), %v1053_v3  ;;  %1064 = vmatpush3.bf16.msra.mxu1 (!%p187_p10), %v1053_v3  ;;  %v407_v13 = vadd.s32 (!%p187_p10), 8, %v406_v11  ;;  %vm410_vm1 = vcmp.le.s32.totalorder (!%p187_p10), %v409_v12, %v406_v11  ;;  %v587_v24 = vcvt.s32.f32 (!%p187_p10), %v406_v11  ;;  %v951_v63 = vld [vmem:[%s1434_s3] ss:$0 sm:$0xff] (!%p187_p10)  ;;  %s215_s7 = scalar_lea.vmem (!%p187_p10), [#allocation4], %s923_s24  ;;  %s1248_s13 = smov (!%p187_p10), [#allocation4]  }
  0x13   : > { %1058 = vmatprep.subr.bf16.mxu0 (!%p187_p10), %v1057_v5  ;;  %1066 = vmatprep.subr.bf16.mxu1 (!%p187_p10), %v1057_v5  ;;  %v930_v15 = vsel (!%p187_p10), %vm410_vm1, 1.0, %v1247_v14  ;;  %s839_s8 = sshll.u32 (!%p187_p10), %s215_s7, 4  ;;  %s1171_s14 = sshll.u32 (!%p187_p10), %s1248_s13, 4  ;;  %s1383_s8 = int_to_ptr.vmem [resolvable:$true] %s839_s8  ;;  %s1172_s14 = int_to_ptr.vmem [resolvable:$false] %s1171_s14 }
  0x14   : > { %vm411_vm3 = vcmp.le.s32.totalorder (!%p187_p10), %v409_v12, %v407_v13  ;;  %v588_v23 = vcvt.s32.f32 (!%p187_p10), %v407_v13  ;;  %v594_v26 = vadd.f32 (!%p187_p10), 1.0, %v587_v24  ;;  %p1174_p1 = scmp.lt.s32.totalorder (!%p187_p10), %s1383_s8, %s1172_s14 }
  0x15   : > { %v931_v16 = vsel (!%p187_p10), %vm411_vm3, 1.0, %v1247_v14 }
  0x16   : > { %s218_s11 = scalar_select %p217_p11, %s1237_s18, 1  ;;  %1060 = vmatpush3.bf16.msra.mxu0 %v1057_v5  ;;  %1068 = vmatpush3.bf16.msra.mxu1 %v1057_v5  ;;  %v595_v25 = vadd.f32 1.0, %v588_v23  ;;  %v596_v28 = vmul.f32 8.0, %v594_v26 }
  0x17   : > { %v932_v29 = vld [vmem:[#allocation2] ss:$0 sm:$0xff]  ;;  %v935_v30 = vld [vmem:[#allocation3] ss:$0 sm:$0xff]  ;;  %s1385_s18 = scalar_lea.sflag [#allocation5], %s213_s22 }
  0x18   : > { %s959_s12 = sshll.u32 %s218_s11, 4  ;;  %v597_v27 = vmul.f32 8.0, %v595_v25  ;;  %s1381_s11 = scalar_lea.hbm %s1435_s4, %s962_s6 }
  0x19   : > { %s224_s21 = scalar_lea.vmem %s1431_s0, %s959_s12  ;;  %s1167_s12 = scalar_lea.vmem %s1383_s8, 128 }
  0x1a   : > { %v1348_v6 = vld [vmem:[%s224_s21] sm:$0xff]  ;;  %v1350_v7 = vld [vmem:[%s224_s21 + $0x8] sm:$0xff]  ;;  %1159 = vrcp.f32 %v597_v27  ;;  %p1168_p12 = scmp.ne.s32.totalorder %s1383_s8, %s1167_s12  ;;  %s1173_s21 = scalar_lea.vmem %s1172_s14, 256 }
  0x1b   : > { %1003 = vmatprep.mubr.msk.f32.mxu0 %vm240_vm0, %v1348_v6  ;;  %v322_v8 = vmul.f32 %v1348_v6, %v1348_v6  ;;  %v323_v9 = vmul.f32 %v1350_v7, %v1350_v7  ;;  %1161 = vrcp.f32 %v596_v28  ;;  %p1175_p2 = scmp.lt.s32.totalorder %s1173_s21, %s1167_s12 }
  0x1c   : > { %1004 = vmatmul.mubr.msk.f32.vlgmr.msra.gmra.mrb[0].mxu0 %vm240_vm0, %v1350_v7  ;;  %p1169_p13 = pnand %p1168_p12, %p1316_p4 }
  0x1d   : > { %1014 = vmatprep.mubr.msk.f32.mxu1 %vm240_vm0, %v322_v8  ;;  %1021 = vmatprep.mubr.msk.f32.mxu0 %vm423_vm2, %v930_v15  ;;  %p1176_p3 = por %p1175_p2, %p1174_p1 }
  0x1e   : > { %1015 = vmatmul.mubr.msk.f32.vlgmr.msra.gmra.mrb[0].mxu1 %vm240_vm0, %v323_v9  ;;  %p1170_p0 = pneg %p1169_p13 }
  0x1f   : > { %1028 = vmatprep.mubr.msk.f32.mxu1 %vm423_vm2, %v930_v15 }
  0x20   : > { %p1177_p5 = pnand %p1176_p3, %p1170_p0 }
  0x24   : > { %v1160_v31 = vpop.eup %1159 }
  0x25   : > { %v1162_v34 = vpop.eup %1161 }
  0xef   : > { %v1005_v17 = vpop.f32.mrb[0].mxu0 }
  0xf0   : > { %v313_v19 = vpop.f32.mrb[1].mxu0 }
  0xf1   : > { %v1016_v18 = vpop.f32.mrb[0].mxu1  ;;  %v1069_v21 = vpack.c.bf16 %v1005_v17, %v313_v19 }
  0xf2   : > { %v396_v20 = vpop.f32.mrb[1].mxu1 }
  0xf3   : > { %v1073_v22 = vpack.c.bf16 %v1016_v18, %v396_v20  ;;  %1070 = vmatprep.subr.bf16.mxu0 %v1069_v21 }
  0xf4   : > { %1072 = vmatpush3.bf16.msra.mxu0 %v1069_v21 }
  0xf5   : > { %1074 = vmatprep.subr.bf16.mxu1 %v1073_v22  ;;  %1079 = vmatprep.subr.msk.bf16.mxu0 %vm1078_vm6, %v1053_v3 }
  0xf6   : > { %1076 = vmatpush3.bf16.msra.mxu1 %v1073_v22 }
  0xf7   : > { %1091 = vmatprep.subr.msk.bf16.mxu1 %vm1078_vm6, %v1053_v3  ;;  %1022 = vmatmul.mubr.msk.f32.vlgmr.msra.gmra.mrb[2].mxu0 %vm423_vm2, %v931_v16 }
  0xf9   : > { %1029 = vmatmul.mubr.msk.f32.vlgmr.msra.gmra.mrb[2].mxu1 %vm423_vm2, %v931_v16 }
  0xfd   : > { %1082 = vmatpush3.bf16.xpose.msk.msra.mxu0 %vm1078_vm6, %v1053_v3 }
  0xfe   : > { %1085 = vmatprep.subr.msk.bf16.mxu0 %vm1078_vm6, %v1057_v5 }
  0xff   : > { %1094 = vmatpush3.bf16.xpose.msk.msra.mxu1 %vm1078_vm6, %v1053_v3 }
 0x100   : > { %1097 = vmatprep.subr.msk.bf16.mxu1 %vm1078_vm6, %v1057_v5 }
 0x105   : > { %1088 = vmatpush3.bf16.xpose.msk.msra.mxu0 %vm1078_vm6, %v1057_v5 }
 0x107   : > { %1100 = vmatpush3.bf16.xpose.msk.msra.mxu1 %vm1078_vm6, %v1057_v5 }
 0x1ca   : > { %v1023_v32 = vpop.f32.mrb[2].mxu0 }
 0x1cb   : > { %v502_v35 = vadd.f32 %v1023_v32, %v932_v29  ;;  %v496_v36 = vpop.f32.mrb[3].mxu0 }
 0x1cc   : > { %v1030_v33 = vpop.f32.mrb[2].mxu1  ;;  %v497_v39 = vadd.f32 %v932_v29, %v496_v36 }
 0x1cd   : > { %v584_v37 = vadd.f32 %v1030_v33, %v935_v30  ;;  %v578_v38 = vpop.f32.mrb[3].mxu1  ;;  %v601_v41 = vmul.f32 %v1160_v31, %v502_v35  ;;  %821 = vst.msk [vmem:[#allocation2 - $0x7] sm:$0x80] %vm820_vm7, %v502_v35 }
 0x1ce   : > { %v579_v40 = vadd.f32 %v935_v30, %v578_v38  ;;  %v599_v43 = vmul.f32 %v1162_v34, %v497_v39 }
 0x1cf   : > { %v603_v42 = vmul.f32 %v1160_v31, %v584_v37  ;;  %822 = vst.msk [vmem:[#allocation3 - $0x7] sm:$0x80] %vm820_vm7, %v584_v37  ;;  %v605_v45 = vmul.f32 %v601_v41, %v601_v41 }
 0x1d0   : > { %v602_v44 = vmul.f32 %v1162_v34, %v579_v40  ;;  %v604_v46 = vmul.f32 %v599_v43, %v599_v43  ;;  %1039 = vmatprep.mubr.msk.f32.mxu0 %vm610_vm5, %v599_v43 }
 0x1d1   : > { %v607_v47 = vsub.f32 %v603_v42, %v605_v45  ;;  %1040 = vmatmul.mubr.msk.f32.vlgmr.msra.gmra.mrb[4].mxu0 %vm610_vm5, %v601_v41 }
 0x1d2   : > { %v606_v48 = vsub.f32 %v602_v44, %v604_v46 }
 0x1d3   : > { %v609_v50 = vmax.f32 %v607_v47, 0.0 }
 0x1d4   : > { %v608_v49 = vmax.f32 %v606_v48, 0.0 }
 0x1d6   : > { %1050 = vmatprep.mubr.msk.f32.mxu1 %vm610_vm5, %v608_v49 }
 0x1d7   : > { %1051 = vmatmul.mubr.msk.f32.vlgmr.msra.gmra.mrb[4].mxu1 %vm610_vm5, %v609_v50 }
 0x2a4   : > { %v1041_v51 = vpop.f32.mrb[4].mxu0 }
 0x2a5   : > { %v695_v52 = vpop.f32.mrb[5].mxu0  ;;  %v705_v57 = vsub.f32 %v1350_v7, %v1041_v51 }
 0x2a6   : > { %v704_v59 = vsub.f32 %v1348_v6, %v695_v52 }
 0x2aa   : > { %v1052_v53 = vpop.f32.mrb[4].mxu1 }
 0x2ab   : > { %v784_v54 = vadd.f32 1e-05, %v1052_v53  ;;  %v778_v55 = vpop.f32.mrb[5].mxu1 }
 0x2ac   : > { %v779_v56 = vadd.f32 1e-05, %v778_v55 }
 0x2ad   : > { %1163 = vrsqrt.f32 %v784_v54 }
 0x2ae   : > { %1165 = vrsqrt.f32 %v779_v56 }
 0x2b7   : > { %v1164_v58 = vpop.eup %1163 }
 0x2b8   : > { %v1166_v61 = vpop.eup %1165  ;;  %v790_v62 = vmul.f32 %v1164_v58, %v705_v57 }
 0x2b9   : > { %v789_v0 = vmul.f32 %v1166_v61, %v704_v59 }
 0x2ba   : > { %v799_v1 = vmul.f32 %v950_v60, %v790_v62 }
 0x2bb   : > { %v798_v2 = vmul.f32 %v950_v60, %v789_v0 }
 0x2bc   : > { %v808_v3 = vadd.f32 %v951_v63, %v799_v1 }
 0x2bd   : > { %v807_v4 = vadd.f32 %v951_v63, %v798_v2 }
 0x2be   : > { %v961_v5 = vpack.c.bf16 %v808_v3, %v808_v3 }
 0x2bf   : > { %v960_v6 = vpack.c.bf16 %v807_v4, %v807_v4 }
 0x2c0   : > { %819 = vst.msk [vmem:[%s215_s7 + $0x4] sm:$0xf] %vm817_vm8, %v961_v5 }
 0x2c1   : > { %818 = vst.msk [vmem:[%s215_s7] sm:$0xf] %vm817_vm8, %v960_v6 }
 0x2c2   : > { %1180 = shalt.err (!%p1177_p5)
}
 0x2c3   : > { %s1181_s22 = scalar_lea.hbm %s1381_s11, 128  ;;  %s1185_s29 = scalar_lea.hbm %s1435_s4, 256 }
 0x2c4   : > { %p1182_p6 = scmp.ne.s32.totalorder %s1381_s11, %s1181_s22  ;;  %p1186_p10 = scmp.lt.u32.totalorder %s1381_s11, %s1435_s4 }
 0x2c5   : > { %p1187_p11 = scmp.lt.u32.totalorder %s1185_s29, %s1181_s22  ;;  %p1189_p13 = scmp.lt.u32.totalorder %s1181_s22, %s1381_s11 }
 0x2c6   : > { %p1183_p7 = pnand %p1182_p6, %p1316_p4 }
 0x2c7   : > { %p1188_p12 = por %p1187_p11, %p1186_p10 }
 0x2c8   : > { %p1184_p9 = pneg %p1183_p7 }
 0x2c9   : > { %p1190_p0 = por %p1189_p13, %p1188_p12 }
 0x2cb   : > { %p1191_p1 = pnand %p1190_p0, %p1184_p9 }
 0x2cd   : > { %1194 = shalt.err (!%p1191_p1)
}
 0x2ce   : > { %s1249_s6 = smov 64   ;;  %s1250_s7 = smov 4  }
 0x2cf   : > { %1101 = dma.vmem_to_hbm [thread:$0]  (%p1316_p4), %s1383_s8, 128, %s1381_s11, %s1385_s18, %s1249_s6, %s1249_s6, %s1250_s7  }
 0x2d0 PF: > { %p1107_p2 = scmp.ge.s32.totalorder %s1245_s20, 2  ;;  %s854_s9 = sand.u32 1, %s1225_s15  }
 0x2d1   : > { %s855_s10 = scalar_lea.sflag [#allocation5], %s854_s9 }
 0x2d2   : > { %p1104_p3 = pnand %p1107_p2, %p1323_p8 }
 0x2d4   : > { %1220 = dma.done.wait (!%p1104_p3), %s855_s10, 128  }
 0x2d5   : > { %1222 = vsyncadd (!%p1104_p3), %s855_s10, 4294967168  ;;  %s17_s20 = sadd.s32 1, %s1245_s20   ;;  %s1438_s15 = smov %s1229_s16 }
 0x2d6   : > { %p14_p5 = scmp.ge.s32.totalorder %s17_s20, 4   ;;  %s1439_s16 = smov %s1233_s17 }
 0x2d7   : > { %s1440_s17 = smov %s1329_s28  ;;  %s1441_s18 = smov %s1241_s19 }
 0x2d8   : > { %s1442_s19 = smov %s1444_s23  ;;  %16 = sbr.rel (!%p14_p5) target bundleno = 4 (0x4), region = 75 }
 0x2df   :  { %860 = vsyncpa [#allocation5], 1 }
 0x2e0   :  { %862 = vsyncpa [#allocation5 + $0x1], 1 }

</bundles_post_ra>
